<compile_context>
chip_gen: v6e
topology: v6e:2x2x1
jax: 0.10.0
libtpu: 0.0.40
codegen_flags: <defaults>
</compile_context>

<pallas_src>
import jax
import jax.numpy as jnp
from jax import lax
from jax.experimental import pallas as pl
from jax.experimental.pallas import tpu as pltpu

LEAKY_SLOPE = 0.2   # DIP's act('LeakyReLU') = nn.LeakyReLU(0.2, inplace=True)
BN_EPS = 1e-5


def _round_up(x, m):
    return ((x + m - 1) // m) * m


def _vreg_tile_bytes(shape, dtype):
    """Rough VMEM footprint of a block: last two dims padded to the native
    (sublane, lane) = (32B/itemsize, 128) tile for the dtype."""
    itemsize = jnp.dtype(dtype).itemsize
    dims = [int(d) for d in shape]
    while len(dims) < 2:
        dims.insert(0, 1)
    sublane = max(8, 32 // itemsize)
    lead = 1
    for d in dims[:-2]:
        lead *= d
    return lead * _round_up(dims[-2], sublane) * _round_up(dims[-1], 128) * itemsize


def _vmem_budget_bytes():
    """Generation-aware scoped-VMEM budget with headroom for compiler scratch."""
    cap = 64 << 20  # conservative fallback (v7x has 64 MiB / TensorCore)
    try:
        info = pltpu.get_tpu_info()
        cap = int(getattr(info, "vmem_capacity_bytes", cap))
    except Exception:
        pass
    return int(min((cap * 3) // 4, 100 << 20))   # ~48 MiB on v7x, ~96 MiB on v5e/v6e


def _pick_tile_rows(ho, est_fn, budget, cap_rows, user_max):
    """Largest divisor of ho that respects the pixel cap, user cap and VMEM budget."""
    limit = ho
    if cap_rows is not None:
        limit = min(limit, max(1, int(cap_rows)))
    if user_max is not None:
        limit = min(limit, max(1, int(user_max)))
    best = 1
    for d in range(1, ho + 1):
        if ho % d:
            continue
        if d <= limit and est_fn(d) <= budget:
            best = d
    return best


def _conv_stats_kernel(a_ref, ah_ref, b_ref, bh_ref, c_ref, d_ref, w_ref,
                       y_ref, psum_ref, psq_ref):
    """One (batch, row-tile) step: 3x3 / stride-2 conv as 9 accumulating GEMMs.

    a  : even-row / even-col phase block (Th, Wo+1, Cin)
    ah : its +1-row halo                 (1,  Wo+1, Cin)
    b  : even-row / odd-col  phase block (Th, Wo,   Cin)
    bh : its +1-row halo                 (1,  Wo,   Cin)
    c  : odd-row  / even-col phase block (Th, Wo+1, Cin)
    d  : odd-row  / odd-col  phase block (Th, Wo,   Cin)
    w  : conv weight                     (3, 3, Cin, Cout)
    y  : conv output tile (compute dtype) (Th, Wo, Cout)
    psum/psq : per-tile channel moments  (1, Cout) f32
    """
    th, wo, cout = y_ref.shape
    cin = a_ref.shape[-1]
    px = th * wo

    a = a_ref[...]
    b = b_ref[...]
    c = c_ref[...]
    d = d_ref[...]
    if th > 1:
        a_dn = jnp.concatenate([a[1:th], ah_ref[...]], axis=0)   # rows ho+1
        b_dn = jnp.concatenate([b[1:th], bh_ref[...]], axis=0)
    else:
        a_dn = ah_ref[...]
        b_dn = bh_ref[...]

    def tap(src, dx):
        # padded-input column 2*wo+dx lives at quad-column wo + dx//2 of the
        # even-column phase (width Wo+1), or quad-column wo of the odd phase.
        if src.shape[1] == wo + 1:
            src = src[:, dx // 2: dx // 2 + wo, :]
        return src.reshape(px, cin)

    def gemm(lhs2d, dy, dx):
        return jnp.dot(lhs2d, w_ref[dy, dx], preferred_element_type=jnp.float32)

    acc = gemm(tap(a, 0), 0, 0)
    acc += gemm(tap(b, 1), 0, 1)
    acc += gemm(tap(a, 2), 0, 2)
    acc += gemm(tap(c, 0), 1, 0)
    acc += gemm(tap(d, 1), 1, 1)
    acc += gemm(tap(c, 2), 1, 2)
    acc += gemm(tap(a_dn, 0), 2, 0)
    acc += gemm(tap(b_dn, 1), 2, 1)
    acc += gemm(tap(a_dn, 2), 2, 2)

    y_ref[...] = acc.reshape(th, wo, cout).astype(y_ref.dtype)
    # Per-tile partial BN moments (f32, exact); finalized outside the kernel so
    # the whole grid stays "parallel" (sharded across TensorCores on v7x).
    psum_ref[...] = jnp.sum(acc, axis=0, keepdims=True)
    psq_ref[...] = jnp.sum(acc * acc, axis=0, keepdims=True)


def _bn_act_kernel(y_ref, scale_ref, shift_ref, o_ref):
    """Folded BN affine (one FMA) + LeakyReLU(0.2), purely elementwise."""
    z = y_ref[...].astype(jnp.float32) * scale_ref[...] + shift_ref[...]
    o_ref[...] = jnp.where(z >= 0, z, LEAKY_SLOPE * z).astype(o_ref.dtype)


def downsample_block(x_nchw, weight, bias, gamma, beta, *,
                     compute_dtype=jnp.bfloat16, out_dtype=None,
                     max_tile_rows=None):
    """x_nchw: (N, Cin, H, W); weight: (Cout, Cin, 3, 3); bias/gamma/beta: (Cout,)."""
    del bias  # Exactly cancelled by the training-mode BN mean subtraction.
    # TODO(synk): reinstate the conv bias if this block is ever run with
    # eval-mode (running) BN statistics.

    N, Cin, H, W = x_nchw.shape
    Cout, Cin_w, kh, kw = weight.shape
    assert (kh, kw) == (3, 3) and Cin_w == Cin
    out_dtype = x_nchw.dtype if out_dtype is None else out_dtype
    cd = compute_dtype

    pad, stride = 1, 2
    Hp, Wp = H + 2 * pad, W + 2 * pad
    Ho = (Hp - kh) // stride + 1
    Wo = (Wp - kw) // stride + 1

    # Reflection pad (matches nn.ReflectionPad2d(1)); NHWC; compute dtype.
    xp = jnp.pad(x_nchw.astype(cd),
                 ((0, 0), (0, 0), (pad, pad), (pad, pad)), mode="reflect")
    xp = jnp.transpose(xp, (0, 2, 3, 1))

    # Even/odd phase split of the padded input: a single space-to-depth style
    # rearrangement (~1x the input size), not a 9x im2col.
    # TODO(synk): assemble the phases fully in-kernel from xp (memory_space=pl.ANY
    # + strided DMA) to drop this XLA-side copy too.
    x00 = xp[:, 0:2 * Ho + 1:2, 0:2 * Wo + 1:2, :]   # (N, Ho+1, Wo+1, Cin)
    x01 = xp[:, 0:2 * Ho + 1:2, 1:2 * Wo:2, :]       # (N, Ho+1, Wo,   Cin)
    x10 = xp[:, 1:2 * Ho:2,     0:2 * Wo + 1:2, :]   # (N, Ho,   Wo+1, Cin)
    x11 = xp[:, 1:2 * Ho:2,     1:2 * Wo:2, :]       # (N, Ho,   Wo,   Cin)

    # Weight -> (kh, kw, Cin, Cout): w[dy, dx] is a (Cin, Cout) GEMM operand.
    w_k = jnp.transpose(weight, (2, 3, 1, 0)).astype(cd)

    budget = _vmem_budget_bytes()
    small_vmem = budget < (60 << 20)                 # v7x-class VMEM
    cap1 = 1024 if small_vmem else 2048              # pass-1 output pixels / step
    cap2 = 2048 if small_vmem else 4096              # pass-2 output pixels / step

    def est_pass1(th):
        io = (2 * _vreg_tile_bytes((th, Wo + 1, Cin), cd)       # x00, x10 blocks
              + 2 * _vreg_tile_bytes((th, Wo, Cin), cd)         # x01, x11 blocks
              + _vreg_tile_bytes((1, Wo + 1, Cin), cd)          # x00 halo
              + _vreg_tile_bytes((1, Wo, Cin), cd)              # x01 halo
              + _vreg_tile_bytes((3, 3, Cin, Cout), cd)         # weights (resident)
              + _vreg_tile_bytes((th, Wo, Cout), cd)            # y tile
              + 2 * _vreg_tile_bytes((1, Cout), jnp.float32))   # partial moments
        scratch = (12 * _vreg_tile_bytes((th * Wo, Cin), cd)    # tap copies/concats
                   + 3 * _vreg_tile_bytes((th * Wo, Cout), jnp.float32))  # f32 acc
        return 2 * io + scratch                                  # double-buffered I/O

    def est_pass2(th):
        io = (_vreg_tile_bytes((th, Wo, Cout), cd)
              + _vreg_tile_bytes((th, Wo, Cout), out_dtype)
              + 2 * _vreg_tile_bytes((1, Cout), jnp.float32))
        return 2 * io + 2 * _vreg_tile_bytes((th * Wo, Cout), jnp.float32)

    th1 = _pick_tile_rows(Ho, est_pass1, budget, cap1 // max(Wo, 1), max_tile_rows)
    th2 = _pick_tile_rows(Ho, est_pass2, budget, cap2 // max(Wo, 1), max_tile_rows)
    t1, t2 = Ho // th1, Ho // th2

    # ---- pass 1: conv (9 accumulating GEMMs) + per-tile BN partial moments ----
    y_nhwc, psum, psq = pl.pallas_call(
        _conv_stats_kernel,
        out_shape=(
            jax.ShapeDtypeStruct((N, Ho, Wo, Cout), cd),
            jax.ShapeDtypeStruct((N, t1, 1, Cout), jnp.float32),
            jax.ShapeDtypeStruct((N, t1, 1, Cout), jnp.float32),
        ),
        grid_spec=pltpu.PrefetchScalarGridSpec(
            num_scalar_prefetch=0,
            grid=(N, t1),
            in_specs=[
                pl.BlockSpec((None, th1, Wo + 1, Cin), lambda n, t: (n, t, 0, 0)),
                pl.BlockSpec((None, 1, Wo + 1, Cin),
                             lambda n, t: (n, t * th1 + th1, 0, 0)),
                pl.BlockSpec((None, th1, Wo, Cin), lambda n, t: (n, t, 0, 0)),
                pl.BlockSpec((None, 1, Wo, Cin),
                             lambda n, t: (n, t * th1 + th1, 0, 0)),
                pl.BlockSpec((None, th1, Wo + 1, Cin), lambda n, t: (n, t, 0, 0)),
                pl.BlockSpec((None, th1, Wo, Cin), lambda n, t: (n, t, 0, 0)),
                pl.BlockSpec((3, 3, Cin, Cout), lambda n, t: (0, 0, 0, 0)),
            ],
            out_specs=[
                pl.BlockSpec((None, th1, Wo, Cout), lambda n, t: (n, t, 0, 0)),
                pl.BlockSpec((None, None, 1, Cout), lambda n, t: (n, t, 0, 0)),
                pl.BlockSpec((None, None, 1, Cout), lambda n, t: (n, t, 0, 0)),
            ],
        ),
        compiler_params=pltpu.CompilerParams(
            dimension_semantics=("parallel", "parallel"),
            vmem_limit_bytes=budget),
    )(x00, x00, x01, x01, x10, x11, w_k)

    # ---- tiny finalize in XLA: global mean/var -> folded (scale, shift) -------
    m_count = jnp.float32(N * Ho * Wo)
    mean = jnp.sum(psum, axis=(0, 1, 2)) / m_count
    var = jnp.sum(psq, axis=(0, 1, 2)) / m_count - mean * mean   # biased (train) var
    scale = gamma.astype(jnp.float32) * lax.rsqrt(var + BN_EPS)
    shift = beta.astype(jnp.float32) - mean * scale
    scale_row = scale.reshape(1, Cout)
    shift_row = shift.reshape(1, Cout)

    # ---- pass 2: folded BN affine + LeakyReLU (elementwise, mem-bound) --------
    out_nhwc = pl.pallas_call(
        _bn_act_kernel,
        out_shape=jax.ShapeDtypeStruct((N, Ho, Wo, Cout), out_dtype),
        grid_spec=pltpu.PrefetchScalarGridSpec(
            num_scalar_prefetch=0,
            grid=(N, t2),
            in_specs=[
                pl.BlockSpec((None, th2, Wo, Cout), lambda n, t: (n, t, 0, 0)),
                pl.BlockSpec((1, Cout), lambda n, t: (0, 0)),
                pl.BlockSpec((1, Cout), lambda n, t: (0, 0)),
            ],
            out_specs=pl.BlockSpec((None, th2, Wo, Cout),
                                   lambda n, t: (n, t, 0, 0)),
        ),
        compiler_params=pltpu.CompilerParams(
            dimension_semantics=("parallel", "parallel"),
            vmem_limit_bytes=budget),
    )(y_nhwc, scale_row, shift_row)

    # TODO(synk): keep NHWC for the downstream layer (or emit NCHW from the
    # kernel) to avoid this full-output XLA transpose.
    return jnp.transpose(out_nhwc, (0, 3, 1, 2))


def _reference(x_nchw, weight, bias, gamma, beta):
    """Pure-JAX reference (lax conv) matching the PyTorch module in train mode."""
    xp = jnp.pad(x_nchw, ((0, 0), (0, 0), (1, 1), (1, 1)), mode="reflect")
    y = lax.conv_general_dilated(
        xp.astype(jnp.float32), weight.astype(jnp.float32),
        window_strides=(2, 2), padding="VALID",
        dimension_numbers=("NCHW", "OIHW", "NCHW"))
    y = y + bias.reshape(1, -1, 1, 1)
    mean = jnp.mean(y, axis=(0, 2, 3), keepdims=True)
    var = jnp.mean((y - mean) ** 2, axis=(0, 2, 3), keepdims=True)
    y = (y - mean) * lax.rsqrt(var + BN_EPS)
    y = gamma.reshape(1, -1, 1, 1) * y + beta.reshape(1, -1, 1, 1)
    return jnp.where(y >= 0, y, LEAKY_SLOPE * y)


if __name__ == "__main__":
    key = jax.random.PRNGKey(0)
    N, Cin, H, W = 2, 4, 16, 16
    Cout, ksz = 8, 3

    kx, kw_, kb, kg, kbt = jax.random.split(key, 5)
    x = jax.random.normal(kx, (N, Cin, H, W), dtype=jnp.float32)

    fan_in = Cin * ksz * ksz
    bound = 1.0 / (fan_in ** 0.5)
    weight = jax.random.uniform(kw_, (Cout, Cin, ksz, ksz), jnp.float32, -bound, bound)
    bias = jax.random.uniform(kb, (Cout,), jnp.float32, -bound, bound)
    gamma = jax.random.uniform(kg, (Cout,), jnp.float32, 0.5, 1.5)
    beta = jax.random.uniform(kbt, (Cout,), jnp.float32, -0.5, 0.5)

    ref = _reference(x, weight, bias, gamma, beta)

    # f32 MXU path, forced to 2 row-tiles per image: exercises the halo blocks
    # and the cross-tile partial-moment reduction. Strict tolerance.
    out_f32 = downsample_block(x, weight, bias, gamma, beta,
                               compute_dtype=jnp.float32, max_tile_rows=4)
    jax.block_until_ready(out_f32)
    assert out_f32.shape == (N, Cout, 8, 8), out_f32.shape
    err32 = float(jnp.max(jnp.abs(out_f32 - ref)))
    assert jnp.allclose(out_f32, ref, atol=1e-4, rtol=1e-4), err32

    # bf16 MXU path with default (auto) tiling: production default, looser
    # tolerance from bf16 inputs / bf16 intermediate; accumulation stays f32.
    out_bf16 = downsample_block(x, weight, bias, gamma, beta,
                                compute_dtype=jnp.bfloat16)
    jax.block_until_ready(out_bf16)
    errbf = float(jnp.max(jnp.abs(out_bf16 - ref)))
    assert jnp.allclose(out_bf16, ref, atol=5e-2, rtol=5e-2), errbf

    print("KERNEL_OK")
</pallas_src>

<mosaic_0001>
module attributes {stable_mosaic.version = 11 : i64} {
  func.func @_conv_stats_kernel(%arg0: i32, %arg1: i32, %arg2: memref<1x4x9x4xf32, #tpu.memory_space<vmem>>, %arg3: memref<1x1x9x4xf32, #tpu.memory_space<vmem>>, %arg4: memref<1x4x8x4xf32, #tpu.memory_space<vmem>>, %arg5: memref<1x1x8x4xf32, #tpu.memory_space<vmem>>, %arg6: memref<1x4x9x4xf32, #tpu.memory_space<vmem>>, %arg7: memref<1x4x8x4xf32, #tpu.memory_space<vmem>>, %arg8: memref<3x3x4x8xf32, #tpu.memory_space<vmem>>, %arg9: memref<1x4x8x8xf32, #tpu.memory_space<vmem>>, %arg10: memref<1x1x1x8xf32, #tpu.memory_space<vmem>>, %arg11: memref<1x1x1x8xf32, #tpu.memory_space<vmem>>) attributes {dimension_semantics = [#tpu.dimension_semantics<parallel>, #tpu.dimension_semantics<parallel>], iteration_bounds = array<i64: 2, 2>, scalar_prefetch = 0 : i64, scratch_operands = 0 : i64, tpu.core_type = #tpu.core_type<tc>, window_params = [{transform_indices = @transform_0, window_bounds = array<i64: 1, 4, 9, 4>}, {transform_indices = @transform_1, window_bounds = array<i64: 1, 1, 9, 4>}, {transform_indices = @transform_2, window_bounds = array<i64: 1, 4, 8, 4>}, {transform_indices = @transform_3, window_bounds = array<i64: 1, 1, 8, 4>}, {transform_indices = @transform_4, window_bounds = array<i64: 1, 4, 9, 4>}, {transform_indices = @transform_5, window_bounds = array<i64: 1, 4, 8, 4>}, {pipeline_mode = #tpu.pipeline_mode<synchronous>, transform_indices = @transform_6, window_bounds = array<i64: 3, 3, 4, 8>}, {transform_indices = @transform_7, window_bounds = array<i64: 1, 4, 8, 8>}, {transform_indices = @transform_8, window_bounds = array<i64: 1, 1, 1, 8>}, {transform_indices = @transform_9, window_bounds = array<i64: 1, 1, 1, 8>}]} {
    %c0 = arith.constant 0 : index
    %c0_0 = arith.constant 0 : index
    %c0_1 = arith.constant 0 : index
    %c0_2 = arith.constant 0 : index
    %0 = vector.load %arg2[%c0, %c0_0, %c0_1, %c0_2] : memref<1x4x9x4xf32, #tpu.memory_space<vmem>>, vector<1x4x9x4xf32>
    %1 = vector.shape_cast %0 : vector<1x4x9x4xf32> to vector<4x9x4xf32>
    %c0_3 = arith.constant 0 : index
    %c0_4 = arith.constant 0 : index
    %c0_5 = arith.constant 0 : index
    %c0_6 = arith.constant 0 : index
    %2 = vector.load %arg4[%c0_3, %c0_4, %c0_5, %c0_6] : memref<1x4x8x4xf32, #tpu.memory_space<vmem>>, vector<1x4x8x4xf32>
    %3 = vector.shape_cast %2 : vector<1x4x8x4xf32> to vector<4x8x4xf32>
    %c0_7 = arith.constant 0 : index
    %c0_8 = arith.constant 0 : index
    %c0_9 = arith.constant 0 : index
    %c0_10 = arith.constant 0 : index
    %4 = vector.load %arg6[%c0_7, %c0_8, %c0_9, %c0_10] : memref<1x4x9x4xf32, #tpu.memory_space<vmem>>, vector<1x4x9x4xf32>
    %5 = vector.shape_cast %4 : vector<1x4x9x4xf32> to vector<4x9x4xf32>
    %c0_11 = arith.constant 0 : index
    %c0_12 = arith.constant 0 : index
    %c0_13 = arith.constant 0 : index
    %c0_14 = arith.constant 0 : index
    %6 = vector.load %arg7[%c0_11, %c0_12, %c0_13, %c0_14] : memref<1x4x8x4xf32, #tpu.memory_space<vmem>>, vector<1x4x8x4xf32>
    %7 = vector.shape_cast %6 : vector<1x4x8x4xf32> to vector<4x8x4xf32>
    %8 = vector.extract_strided_slice %1 {offsets = [1, 0, 0], sizes = [3, 9, 4], strides = [1, 1, 1]} : vector<4x9x4xf32> to vector<3x9x4xf32>
    %c0_15 = arith.constant 0 : index
    %c0_16 = arith.constant 0 : index
    %c0_17 = arith.constant 0 : index
    %c0_18 = arith.constant 0 : index
    %9 = vector.load %arg3[%c0_15, %c0_16, %c0_17, %c0_18] : memref<1x1x9x4xf32, #tpu.memory_space<vmem>>, vector<1x1x9x4xf32>
    %10 = vector.shape_cast %9 : vector<1x1x9x4xf32> to vector<1x9x4xf32>
    %11 = tpu.concatenate %8, %10 in 0 : vector<3x9x4xf32>, vector<1x9x4xf32> -> vector<4x9x4xf32>
    %12 = vector.extract_strided_slice %3 {offsets = [1, 0, 0], sizes = [3, 8, 4], strides = [1, 1, 1]} : vector<4x8x4xf32> to vector<3x8x4xf32>
    %c0_19 = arith.constant 0 : index
    %c0_20 = arith.constant 0 : index
    %c0_21 = arith.constant 0 : index
    %c0_22 = arith.constant 0 : index
    %13 = vector.load %arg5[%c0_19, %c0_20, %c0_21, %c0_22] : memref<1x1x8x4xf32, #tpu.memory_space<vmem>>, vector<1x1x8x4xf32>
    %14 = vector.shape_cast %13 : vector<1x1x8x4xf32> to vector<1x8x4xf32>
    %15 = tpu.concatenate %12, %14 in 0 : vector<3x8x4xf32>, vector<1x8x4xf32> -> vector<4x8x4xf32>
    %16 = vector.extract_strided_slice %1 {offsets = [0, 0, 0], sizes = [4, 8, 4], strides = [1, 1, 1]} : vector<4x9x4xf32> to vector<4x8x4xf32>
    %17 = vector.shape_cast %16 : vector<4x8x4xf32> to vector<32x4xf32>
    %c0_23 = arith.constant 0 : index
    %c0_24 = arith.constant 0 : index
    %c0_25 = arith.constant 0 : index
    %c0_26 = arith.constant 0 : index
    %18 = vector.load %arg8[%c0_23, %c0_24, %c0_25, %c0_26] : memref<3x3x4x8xf32, #tpu.memory_space<vmem>>, vector<1x1x4x8xf32>
    %19 = vector.shape_cast %18 : vector<1x1x4x8xf32> to vector<4x8xf32>
    %cst = arith.constant dense<0.000000e+00> : vector<32x8xf32>
    %20 = tpu.matmul %17, %19, %cst {dimension_numbers = #tpu.dot_dimension_numbers<[1], [0], [0], [1], [0, 0, 1, 1], [], []>} : vector<32x4xf32>, vector<4x8xf32>, vector<32x8xf32> -> vector<32x8xf32>
    %21 = vector.shape_cast %3 : vector<4x8x4xf32> to vector<32x4xf32>
    %c0_27 = arith.constant 0 : index
    %c1 = arith.constant 1 : index
    %c0_28 = arith.constant 0 : index
    %c0_29 = arith.constant 0 : index
    %22 = vector.load %arg8[%c0_27, %c1, %c0_28, %c0_29] : memref<3x3x4x8xf32, #tpu.memory_space<vmem>>, vector<1x1x4x8xf32>
    %23 = vector.shape_cast %22 : vector<1x1x4x8xf32> to vector<4x8xf32>
    %cst_30 = arith.constant dense<0.000000e+00> : vector<32x8xf32>
    %24 = tpu.matmul %21, %23, %cst_30 {dimension_numbers = #tpu.dot_dimension_numbers<[1], [0], [0], [1], [0, 0, 1, 1], [], []>} : vector<32x4xf32>, vector<4x8xf32>, vector<32x8xf32> -> vector<32x8xf32>
    %25 = arith.addf %20, %24 : vector<32x8xf32>
    %26 = vector.extract_strided_slice %1 {offsets = [0, 1, 0], sizes = [4, 8, 4], strides = [1, 1, 1]} : vector<4x9x4xf32> to vector<4x8x4xf32>
    %27 = vector.shape_cast %26 : vector<4x8x4xf32> to vector<32x4xf32>
    %c0_31 = arith.constant 0 : index
    %c2 = arith.constant 2 : index
    %c0_32 = arith.constant 0 : index
    %c0_33 = arith.constant 0 : index
    %28 = vector.load %arg8[%c0_31, %c2, %c0_32, %c0_33] : memref<3x3x4x8xf32, #tpu.memory_space<vmem>>, vector<1x1x4x8xf32>
    %29 = vector.shape_cast %28 : vector<1x1x4x8xf32> to vector<4x8xf32>
    %cst_34 = arith.constant dense<0.000000e+00> : vector<32x8xf32>
    %30 = tpu.matmul %27, %29, %cst_34 {dimension_numbers = #tpu.dot_dimension_numbers<[1], [0], [0], [1], [0, 0, 1, 1], [], []>} : vector<32x4xf32>, vector<4x8xf32>, vector<32x8xf32> -> vector<32x8xf32>
    %31 = arith.addf %25, %30 : vector<32x8xf32>
    %32 = vector.extract_strided_slice %5 {offsets = [0, 0, 0], sizes = [4, 8, 4], strides = [1, 1, 1]} : vector<4x9x4xf32> to vector<4x8x4xf32>
    %33 = vector.shape_cast %32 : vector<4x8x4xf32> to vector<32x4xf32>
    %c1_35 = arith.constant 1 : index
    %c0_36 = arith.constant 0 : index
    %c0_37 = arith.constant 0 : index
    %c0_38 = arith.constant 0 : index
    %34 = vector.load %arg8[%c1_35, %c0_36, %c0_37, %c0_38] : memref<3x3x4x8xf32, #tpu.memory_space<vmem>>, vector<1x1x4x8xf32>
    %35 = vector.shape_cast %34 : vector<1x1x4x8xf32> to vector<4x8xf32>
    %cst_39 = arith.constant dense<0.000000e+00> : vector<32x8xf32>
    %36 = tpu.matmul %33, %35, %cst_39 {dimension_numbers = #tpu.dot_dimension_numbers<[1], [0], [0], [1], [0, 0, 1, 1], [], []>} : vector<32x4xf32>, vector<4x8xf32>, vector<32x8xf32> -> vector<32x8xf32>
    %37 = arith.addf %31, %36 : vector<32x8xf32>
    %38 = vector.shape_cast %7 : vector<4x8x4xf32> to vector<32x4xf32>
    %c1_40 = arith.constant 1 : index
    %c1_41 = arith.constant 1 : index
    %c0_42 = arith.constant 0 : index
    %c0_43 = arith.constant 0 : index
    %39 = vector.load %arg8[%c1_40, %c1_41, %c0_42, %c0_43] : memref<3x3x4x8xf32, #tpu.memory_space<vmem>>, vector<1x1x4x8xf32>
    %40 = vector.shape_cast %39 : vector<1x1x4x8xf32> to vector<4x8xf32>
    %cst_44 = arith.constant dense<0.000000e+00> : vector<32x8xf32>
    %41 = tpu.matmul %38, %40, %cst_44 {dimension_numbers = #tpu.dot_dimension_numbers<[1], [0], [0], [1], [0, 0, 1, 1], [], []>} : vector<32x4xf32>, vector<4x8xf32>, vector<32x8xf32> -> vector<32x8xf32>
    %42 = arith.addf %37, %41 : vector<32x8xf32>
    %43 = vector.extract_strided_slice %5 {offsets = [0, 1, 0], sizes = [4, 8, 4], strides = [1, 1, 1]} : vector<4x9x4xf32> to vector<4x8x4xf32>
    %44 = vector.shape_cast %43 : vector<4x8x4xf32> to vector<32x4xf32>
    %c1_45 = arith.constant 1 : index
    %c2_46 = arith.constant 2 : index
    %c0_47 = arith.constant 0 : index
    %c0_48 = arith.constant 0 : index
    %45 = vector.load %arg8[%c1_45, %c2_46, %c0_47, %c0_48] : memref<3x3x4x8xf32, #tpu.memory_space<vmem>>, vector<1x1x4x8xf32>
    %46 = vector.shape_cast %45 : vector<1x1x4x8xf32> to vector<4x8xf32>
    %cst_49 = arith.constant dense<0.000000e+00> : vector<32x8xf32>
    %47 = tpu.matmul %44, %46, %cst_49 {dimension_numbers = #tpu.dot_dimension_numbers<[1], [0], [0], [1], [0, 0, 1, 1], [], []>} : vector<32x4xf32>, vector<4x8xf32>, vector<32x8xf32> -> vector<32x8xf32>
    %48 = arith.addf %42, %47 : vector<32x8xf32>
    %49 = vector.extract_strided_slice %11 {offsets = [0, 0, 0], sizes = [4, 8, 4], strides = [1, 1, 1]} : vector<4x9x4xf32> to vector<4x8x4xf32>
    %50 = vector.shape_cast %49 : vector<4x8x4xf32> to vector<32x4xf32>
    %c2_50 = arith.constant 2 : index
    %c0_51 = arith.constant 0 : index
    %c0_52 = arith.constant 0 : index
    %c0_53 = arith.constant 0 : index
    %51 = vector.load %arg8[%c2_50, %c0_51, %c0_52, %c0_53] : memref<3x3x4x8xf32, #tpu.memory_space<vmem>>, vector<1x1x4x8xf32>
    %52 = vector.shape_cast %51 : vector<1x1x4x8xf32> to vector<4x8xf32>
    %cst_54 = arith.constant dense<0.000000e+00> : vector<32x8xf32>
    %53 = tpu.matmul %50, %52, %cst_54 {dimension_numbers = #tpu.dot_dimension_numbers<[1], [0], [0], [1], [0, 0, 1, 1], [], []>} : vector<32x4xf32>, vector<4x8xf32>, vector<32x8xf32> -> vector<32x8xf32>
    %54 = arith.addf %48, %53 : vector<32x8xf32>
    %55 = vector.shape_cast %15 : vector<4x8x4xf32> to vector<32x4xf32>
    %c2_55 = arith.constant 2 : index
    %c1_56 = arith.constant 1 : index
    %c0_57 = arith.constant 0 : index
    %c0_58 = arith.constant 0 : index
    %56 = vector.load %arg8[%c2_55, %c1_56, %c0_57, %c0_58] : memref<3x3x4x8xf32, #tpu.memory_space<vmem>>, vector<1x1x4x8xf32>
    %57 = vector.shape_cast %56 : vector<1x1x4x8xf32> to vector<4x8xf32>
    %cst_59 = arith.constant dense<0.000000e+00> : vector<32x8xf32>
    %58 = tpu.matmul %55, %57, %cst_59 {dimension_numbers = #tpu.dot_dimension_numbers<[1], [0], [0], [1], [0, 0, 1, 1], [], []>} : vector<32x4xf32>, vector<4x8xf32>, vector<32x8xf32> -> vector<32x8xf32>
    %59 = arith.addf %54, %58 : vector<32x8xf32>
    %60 = vector.extract_strided_slice %11 {offsets = [0, 1, 0], sizes = [4, 8, 4], strides = [1, 1, 1]} : vector<4x9x4xf32> to vector<4x8x4xf32>
    %61 = vector.shape_cast %60 : vector<4x8x4xf32> to vector<32x4xf32>
    %c2_60 = arith.constant 2 : index
    %c2_61 = arith.constant 2 : index
    %c0_62 = arith.constant 0 : index
    %c0_63 = arith.constant 0 : index
    %62 = vector.load %arg8[%c2_60, %c2_61, %c0_62, %c0_63] : memref<3x3x4x8xf32, #tpu.memory_space<vmem>>, vector<1x1x4x8xf32>
    %63 = vector.shape_cast %62 : vector<1x1x4x8xf32> to vector<4x8xf32>
    %cst_64 = arith.constant dense<0.000000e+00> : vector<32x8xf32>
    %64 = tpu.matmul %61, %63, %cst_64 {dimension_numbers = #tpu.dot_dimension_numbers<[1], [0], [0], [1], [0, 0, 1, 1], [], []>} : vector<32x4xf32>, vector<4x8xf32>, vector<32x8xf32> -> vector<32x8xf32>
    %65 = arith.addf %59, %64 : vector<32x8xf32>
    %66 = vector.shape_cast %65 : vector<32x8xf32> to vector<4x8x8xf32>
    %c0_65 = arith.constant 0 : index
    %c0_66 = arith.constant 0 : index
    %c0_67 = arith.constant 0 : index
    %c0_68 = arith.constant 0 : index
    %67 = vector.load %arg9[%c0_65, %c0_66, %c0_67, %c0_68] : memref<1x4x8x8xf32, #tpu.memory_space<vmem>>, vector<1x4x8x8xf32>
    %68 = vector.shape_cast %67 : vector<1x4x8x8xf32> to vector<4x8x8xf32>
    %69 = vector.shape_cast %66 : vector<4x8x8xf32> to vector<1x4x8x8xf32>
    tpu.vector_store %arg9[%c0_65, %c0_66, %c0_67, %c0_68], %69 {strides = array<i32>} : memref<1x4x8x8xf32, #tpu.memory_space<vmem>>, vector<1x4x8x8xf32>,
    %cst_69 = arith.constant dense<0.000000e+00> : vector<8xf32>
    %70 = vector.multi_reduction <add>, %65, %cst_69 [0] : vector<32x8xf32> to vector<8xf32>
    %71 = vector.shape_cast %70 : vector<8xf32> to vector<1x8xf32>
    %c0_70 = arith.constant 0 : index
    %c0_71 = arith.constant 0 : index
    %c0_72 = arith.constant 0 : index
    %c0_73 = arith.constant 0 : index
    %72 = vector.load %arg10[%c0_70, %c0_71, %c0_72, %c0_73] : memref<1x1x1x8xf32, #tpu.memory_space<vmem>>, vector<1x1x1x8xf32>
    %73 = vector.shape_cast %72 : vector<1x1x1x8xf32> to vector<1x8xf32>
    %74 = vector.shape_cast %71 : vector<1x8xf32> to vector<1x1x1x8xf32>
    tpu.vector_store %arg10[%c0_70, %c0_71, %c0_72, %c0_73], %74 {strides = array<i32>} : memref<1x1x1x8xf32, #tpu.memory_space<vmem>>, vector<1x1x1x8xf32>,
    %75 = arith.mulf %65, %65 : vector<32x8xf32>
    %cst_74 = arith.constant dense<0.000000e+00> : vector<8xf32>
    %76 = vector.multi_reduction <add>, %75, %cst_74 [0] : vector<32x8xf32> to vector<8xf32>
    %77 = vector.shape_cast %76 : vector<8xf32> to vector<1x8xf32>
    %c0_75 = arith.constant 0 : index
    %c0_76 = arith.constant 0 : index
    %c0_77 = arith.constant 0 : index
    %c0_78 = arith.constant 0 : index
    %78 = vector.load %arg11[%c0_75, %c0_76, %c0_77, %c0_78] : memref<1x1x1x8xf32, #tpu.memory_space<vmem>>, vector<1x1x1x8xf32>
    %79 = vector.shape_cast %78 : vector<1x1x1x8xf32> to vector<1x8xf32>
    %80 = vector.shape_cast %77 : vector<1x8xf32> to vector<1x1x1x8xf32>
    tpu.vector_store %arg11[%c0_75, %c0_76, %c0_77, %c0_78], %80 {strides = array<i32>} : memref<1x1x1x8xf32, #tpu.memory_space<vmem>>, vector<1x1x1x8xf32>,
    return
  }
  func.func @transform_0(%arg0: i32, %arg1: i32) -> (i32, i32, i32, i32) {
    %c0_i32 = arith.constant 0 : i32
    %c0_i32_0 = arith.constant 0 : i32
    %c0_i32_1 = arith.constant 0 : i32
    return %arg0, %arg1, %c0_i32, %c0_i32_0 : i32, i32, i32, i32
  }
  func.func @transform_1(%arg0: i32, %arg1: i32) -> (i32, i32, i32, i32) {
    %c4_i32 = arith.constant 4 : i32
    %0 = arith.muli %arg1, %c4_i32 : i32
    %c4_i32_0 = arith.constant 4 : i32
    %1 = arith.addi %0, %c4_i32_0 : i32
    %c0_i32 = arith.constant 0 : i32
    %c0_i32_1 = arith.constant 0 : i32
    %c0_i32_2 = arith.constant 0 : i32
    return %arg0, %1, %c0_i32, %c0_i32_1 : i32, i32, i32, i32
  }
  func.func @transform_2(%arg0: i32, %arg1: i32) -> (i32, i32, i32, i32) {
    %c0_i32 = arith.constant 0 : i32
    %c0_i32_0 = arith.constant 0 : i32
    %c0_i32_1 = arith.constant 0 : i32
    return %arg0, %arg1, %c0_i32, %c0_i32_0 : i32, i32, i32, i32
  }
  func.func @transform_3(%arg0: i32, %arg1: i32) -> (i32, i32, i32, i32) {
    %c4_i32 = arith.constant 4 : i32
    %0 = arith.muli %arg1, %c4_i32 : i32
    %c4_i32_0 = arith.constant 4 : i32
    %1 = arith.addi %0, %c4_i32_0 : i32
    %c0_i32 = arith.constant 0 : i32
    %c0_i32_1 = arith.constant 0 : i32
    %c0_i32_2 = arith.constant 0 : i32
    return %arg0, %1, %c0_i32, %c0_i32_1 : i32, i32, i32, i32
  }
  func.func @transform_4(%arg0: i32, %arg1: i32) -> (i32, i32, i32, i32) {
    %c0_i32 = arith.constant 0 : i32
    %c0_i32_0 = arith.constant 0 : i32
    %c0_i32_1 = arith.constant 0 : i32
    return %arg0, %arg1, %c0_i32, %c0_i32_0 : i32, i32, i32, i32
  }
  func.func @transform_5(%arg0: i32, %arg1: i32) -> (i32, i32, i32, i32) {
    %c0_i32 = arith.constant 0 : i32
    %c0_i32_0 = arith.constant 0 : i32
    %c0_i32_1 = arith.constant 0 : i32
    return %arg0, %arg1, %c0_i32, %c0_i32_0 : i32, i32, i32, i32
  }
  func.func @transform_6(%arg0: i32, %arg1: i32) -> (i32, i32, i32, i32) {
    %c0_i32 = arith.constant 0 : i32
    %c0_i32_0 = arith.constant 0 : i32
    %c0_i32_1 = arith.constant 0 : i32
    %c0_i32_2 = arith.constant 0 : i32
    %c0_i32_3 = arith.constant 0 : i32
    return %c0_i32, %c0_i32_0, %c0_i32_1, %c0_i32_2 : i32, i32, i32, i32
  }
  func.func @transform_7(%arg0: i32, %arg1: i32) -> (i32, i32, i32, i32) {
    %c0_i32 = arith.constant 0 : i32
    %c0_i32_0 = arith.constant 0 : i32
    %c0_i32_1 = arith.constant 0 : i32
    return %arg0, %arg1, %c0_i32, %c0_i32_0 : i32, i32, i32, i32
  }
  func.func @transform_8(%arg0: i32, %arg1: i32) -> (i32, i32, i32, i32) {
    %c0_i32 = arith.constant 0 : i32
    %c0_i32_0 = arith.constant 0 : i32
    %c0_i32_1 = arith.constant 0 : i32
    return %arg0, %arg1, %c0_i32, %c0_i32_0 : i32, i32, i32, i32
  }
  func.func @transform_9(%arg0: i32, %arg1: i32) -> (i32, i32, i32, i32) {
    %c0_i32 = arith.constant 0 : i32
    %c0_i32_0 = arith.constant 0 : i32
    %c0_i32_1 = arith.constant 0 : i32
    return %arg0, %arg1, %c0_i32, %c0_i32_0 : i32, i32, i32, i32
  }
}

</mosaic_0001>

<bundles_post_ra>
// kernel: tpu_custom_call.1
= control target key start
LH: loop header
LB: loop body
LE: loop exit
PB: predicated region body
PF: predicated region fallthrough
CT: control target
= control target key end

     0   :  { %s2877_s0 = inlined_call_operand.vmem [shape: f32[2,9,9,4], index: 0, kind: input, shape index: {}]   ;;  %s2878_s1 = inlined_call_operand.vmem [shape: f32[2,9,9,4], index: 1, kind: input, shape index: {}]   ;;  %s2879_s2 = inlined_call_operand.vmem [shape: f32[2,9,8,4], index: 2, kind: input, shape index: {}]   ;;  %s2880_s3 = inlined_call_operand.vmem [shape: f32[2,9,8,4], index: 3, kind: input, shape index: {}]   ;;  %s2881_s4 = inlined_call_operand.vmem [shape: f32[2,8,9,4], index: 4, kind: input, shape index: {}]   ;;  %s2882_s5 = inlined_call_operand.vmem [shape: f32[2,8,8,4], index: 5, kind: input, shape index: {}]   ;;  %s2883_s6 = inlined_call_operand.vmem [shape: f32[3,3,4,8], index: 6, kind: input, shape index: {}]   ;;  %s2884_s7 = inlined_call_operand.hbm [shape: f32[2,8,8,8], index: 7, kind: output, shape index: {0}]   ;;  %s2885_s8 = inlined_call_operand.hbm [shape: f32[2,2,1,8], index: 8, kind: output, shape index: {1}]   ;;  %s2886_s9 = inlined_call_operand.hbm [shape: f32[2,2,1,8], index: 9, kind: output, shape index: {2}]  }
   0x1   :  { %2897 = sst [smem:[#allocation17_spill]] %s2886_s9 }
   0x2   :  { %15 = vsyncpa [#allocation3], 0 }
   0x3   :  { %17 = vsyncpa [#allocation3 + $0x1], 0 }
   0x4   :  { %18 = vsyncpa [#allocation5], 0 }
   0x5   :  { %20 = vsyncpa [#allocation5 + $0x1], 0  ;;  %s2438_s30 = smov 0   ;;  %s2440_s10 = smov 0  }
   0x6   :  { %s2442_s11 = smov 0   ;;  %s2444_s12 = smov 0  }
   0x7   :  { %s2446_s13 = smov 0   ;;  %s2448_s14 = smov 0  }
   0x8   :  { %s2450_s15 = smov 0   ;;  %s2452_s16 = smov 0  }
   0x9 LB: > { %2898 = sst [smem:[#allocation9_spill]] %s2353_s30  ;;  %s2888_s17 = sadd.s32 4294967295, %s2381_s16   ;;  %s2381_s16 = sphi %s2452_s16, %s26_s16   ;;  %s2377_s15 = sphi %s2450_s15, %s2919_s15   ;;  %s2373_s14 = sphi %s2448_s14, %s2918_s14   ;;  %s2369_s13 = sphi %s2446_s13, %s2917_s13   ;;  %s2365_s12 = sphi %s2444_s12, %s2916_s12   ;;  %s2361_s11 = sphi %s2442_s11, %s2915_s11   ;;  %s2357_s10 = sphi %s2440_s10, %s2921_s10   ;;  %s2353_s30 = sphi %s2438_s30, %s2920_s30  }
   0xa   : > { %2899 = sst [smem:[#allocation10_spill]] %s2361_s11  ;;  %s2887_s18 = sadd.s32 4294967294, %s2381_s16  }
   0xb   : > { %2900 = sst [smem:[#allocation11_spill]] %s2373_s14  ;;  %s35_s19 = sadd.s32 1, %s2373_s14 }
   0xc   : > { %2901 = sst [smem:[#allocation12_spill]] %s2377_s15  ;;  %p36_p0 = scmp.ge.s32.totalorder %s35_s19, 2 }
   0xd   : > { %s38_s20 = sadd.s32 1, %s2377_s15  ;;  %p254_p1 = scmp.ne.s32.totalorder %s2361_s11, %s2357_s10 }
   0xe   : > { %p255_p2 = scmp.eq.s32.totalorder %s2888_s17, 3  ;;  %s2923_s19 = smov (%p36_p0, %s35_s19), 0 }
   0xf   : > { %2902 = sst [smem:[#allocation13_spill]] %s2923_s19  ;;  %s2925_s20 = smov (!%p36_p0, %s38_s20), %s2377_s15 }
  0x10   : > { %s240_s21 = ssub.s32 %s2373_s14, %s2923_s19  ;;  %p2491_p3 = por %p255_p2, %p254_p1 }
  0x11   : > { %p40_p4 = scmp.ge.s32.totalorder %s2925_s20, 2  ;;  %p260_p5 = scmp.ne.s32.totalorder %s2357_s10, %s2353_s30 }
  0x12   : > { %p261_p6 = scmp.eq.s32.totalorder %s2887_s18, 3  ;;  %p1947_p7 = scmp.ge.s32.totalorder %s2381_s16, 1 }
  0x13   : > { %s2927_s20 = smov (%p40_p4, %s2925_s20), 0  ;;  %p441_p9 = scmp.lt.s32.totalorder %s2381_s16, 5 }
  0x14   : > { %2904 = sst [smem:[#allocation14_spill]] %s2927_s20  ;;  %p2502_p8 = por %p261_p6, %p260_p5 }
  0x15   : > { %s239_s24 = ssub.s32 %s2377_s15, %s2927_s20  ;;  %s244_s25 = sadd.s32 1, %s2361_s11 }
  0x16   : > { %s2905_s23 = scalar_select %p2502_p8, 1, 0 }
  0x17   : > { %s241_s26 = sor.u32 %s240_s21, %s239_s24  ;;  %p442_p10 = pnand %p1947_p7, %p441_p9 }
  0x18   : > { %2906 = sst [smem:[#allocation15_spill]] %s2905_s23  ;;  %p242_p11 = scmp.eq.s32.totalorder %s241_s26, 0 }
  0x19   : > { %445 = sbr.rel (%p442_p10) target bundleno = 335 (0x14f), region = 48  ;;  %s2517_s18 = sshll.u32 (!%p442_p10), %s2365_s12, 2 }
  0x1a   : > { %s2511_s27 = scalar_select %p242_p11, %s2361_s11, %s244_s25  }
  0x1b   : > { %p554_p12 = scmp.lt.s32.totalorder (!%p442_p10), %s2369_s13, 1  ;;  %p556_p13 = scmp.lt.s32.totalorder (!%p442_p10), %s2517_s18, 8 }
  0x1c   : > { %2907 = sst [smem:[#allocation16_spill]] %s2511_s27  ;;  %p615_p0 = scmp.lt.s32.totalorder (!%p442_p10), %s2517_s18, 7 }
  0x1e   : > { %v1966_v0 = vld [vmem:[%s2883_s6 + $0x4] sm:$0xf]  ;;  %vm677_vm0 = vcmask 1043456   ;;  %v661_v1 = vld [vmem:[%s2883_s6] sm:$0xf]  ;;  %s2532_s28 = scalar_select %p554_p12, %s2369_s13, 1 }
  0x1f   : > { %2146 = vmatprep.subr.msk.mxu1 %vm677_vm0, %v1966_v0  ;;  %2074 = vmatprep.subr.msk.mxu0 %vm677_vm0, %v1966_v0  ;;  %v1977_v2 = vld [vmem:[%s2883_s6 + $0x8] sm:$0xf]  ;;  %s557_s29 = scalar_select %p556_p13, %s2517_s18, 8  ;;  %vm664_vm1 = vcmask 31744   ;;  %vm870_vm2 = vcmask 1046528   ;;  %vm1609_vm3 = vcmask 64512  }
  0x20   : > { %2147 = vmatpush3.msk.msra.mxu1 %vm677_vm0, %v1966_v0  ;;  %2075 = vmatpush3.msk.msra.mxu0 %vm677_vm0, %v1966_v0  ;;  %s2148_s21 = smul.u32 18, %s2532_s28  ;;  %s1961_s17 = sshll.u32 %s2532_s28, 4  ;;  %v1983_v11 = vld [vmem:[%s2883_s6 + $0xc] sm:$0xf]  ;;  %v1989_v13 = vld [vmem:[%s2883_s6 + $0x10] sm:$0xf] }
  0x21   : > { %2082 = vmatprep.subr.msk.mxu1 %vm677_vm0, %v661_v1  ;;  %2090 = vmatprep.subr.msk.mxu0 %vm677_vm0, %v1977_v2  ;;  %s1950_s24 = sshll.u32 %s557_s29, 1  ;;  %s2149_s25 = smul.u32 9, %s2532_s28  ;;  %v1995_v28 = vld [vmem:[%s2883_s6 + $0x14] sm:$0xf]  ;;  %v2001_v29 = vld [vmem:[%s2883_s6 + $0x18] sm:$0xf] }
  0x22   : > { %s560_s26 = sadd.s32 %s2148_s21, %s1950_s24  ;;  %s1964_s14 = sshll.u32 %s2532_s28, 3  ;;  %v2007_v41 = vld [vmem:[%s2883_s6 + $0x1c] sm:$0xf]  ;;  %v2013_v42 = vld [vmem:[%s2883_s6 + $0x20] sm:$0xf] }
  0x23   : > { %s1951_s20 = sshll.u32 %s560_s26, 3  ;;  %s592_s19 = sadd.s32 %s2149_s25, %s557_s29 }
  0x24   : > { %s2548_s27 = scalar_lea.vmem %s2877_s0, %s1951_s20  ;;  %s1956_s11 = sshll.u32 %s592_s19, 3 }
  0x25   : > { %s594_s9 = scalar_lea.vmem %s2879_s2, %s1956_s11  ;;  %v634_v3 = vld [vmem:[%s2548_s27] sm:$0xff]  ;;  %v635_v4 = vld [vmem:[%s2548_s27 + $0x8] sm:$0x1]  ;;  %v2556_v5 = vld [vmem:[%s2548_s27 + $0x10] sm:$0xff] }
  0x26   : > { %v642_v6 = vld [vmem:[%s594_s9] sm:$0xff]  ;;  %v2559_v7 = vld [vmem:[%s594_s9 + $0x10] sm:$0xff]  ;;  %v2561_v8 = vld [vmem:[%s594_s9 + $0x8] sm:$0xff]  ;;  %v871_v9 = vrot.slane %v634_v3, 1  ;;  %v872_v10 = vrot.slane %v635_v4, 1  ;;  %v874_v12 = vrot.slane %v2556_v5, 1 }
  0x27   : > { %2076 = vmatprep.mubr.msk.f32.mxu0 %vm664_vm1, %v642_v6  ;;  %2079 = vmatprep.mubr.msk.f32.mxu1 %vm664_vm1, %v2559_v7  ;;  %v2573_v14 = vld [vmem:[%s594_s9 + $0x18] sm:$0xff]  ;;  %v2577_v16 = vld [vmem:[%s2548_s27 + $0x20] sm:$0xff]  ;;  %s616_s20 = scalar_select %p615_p0, %s2517_s18, 7  ;;  %v639_v20 = vld [vmem:[%s2548_s27 + $0x28] sm:$0x1] }
  0x28   : > { %v637_v15 = vld [vmem:[%s2548_s27 + $0x18] sm:$0x1]  ;;  %2077 = vmatmul.mubr.msk.f32.vlgmr.msra.gmra.mxu0 %vm664_vm1, %v2561_v8  ;;  %2080 = vmatmul.mubr.msk.f32.vlgmr.msra.gmra.mxu1 %vm664_vm1, %v2573_v14  ;;  %v873_v17 = vsel %vm870_vm2, %v871_v9, %v872_v10  ;;  %v877_v19 = vrot.slane %v2577_v16, 1  ;;  %v2590_v21 = vld [vmem:[%s2548_s27 + $0x30] sm:$0xff]  ;;  %s570_s9 = sadd.s32 4, %s2517_s18  ;;  %v878_v22 = vrot.slane %v639_v20, 1 }
  0x29   : > { %v875_v18 = vrot.slane %v637_v15, 1  ;;  %2083 = vmatpush3.msk.msra.mxu1 %vm677_vm0, %v661_v1  ;;  %2091 = vmatpush3.msk.msra.mxu0 %vm677_vm0, %v1977_v2  ;;  %v880_v23 = vrot.slane %v2590_v21, 1  ;;  %v641_v24 = vld [vmem:[%s2548_s27 + $0x38] sm:$0x1]  ;;  %s1960_s23 = sshll.u32 %s616_s20, 1  ;;  %s629_s29 = sadd.s32 %s1964_s14, %s616_s20 }
  0x2a   : > { %2084 = vmatprep.mubr.msk.f32.mxu1 %vm664_vm1, %v634_v3  ;;  %2092 = vmatprep.mubr.msk.f32.mxu0 %vm664_vm1, %v873_v17  ;;  %v881_v26 = vrot.slane %v641_v24, 1  ;;  %s619_s24 = sadd.s32 %s1961_s17, %s1960_s23  ;;  %s1965_s26 = sshll.u32 %s629_s29, 3  ;;  %v2609_v27 = vsel %vm870_vm2, %v877_v19, %v878_v22 }
  0x2b   : > { %v2602_v25 = vsel %vm870_vm2, %v874_v12, %v875_v18  ;;  %2098 = vmatprep.subr.msk.mxu1 %vm677_vm0, %v1983_v11  ;;  %2106 = vmatprep.subr.msk.mxu0 %vm677_vm0, %v1989_v13  ;;  %s1962_s27 = sshll.u32 %s619_s24, 3  ;;  %s2614_s11 = scalar_lea.vmem %s2882_s5, %s1965_s26 }
  0x2c   : > { %2085 = vmatmul.mubr.msk.f32.vlgmr.msra.gmra.mxu1 %vm664_vm1, %v2556_v5  ;;  %2093 = vmatmul.mubr.msk.f32.vlgmr.msra.gmra.mxu0 %vm664_vm1, %v2602_v25  ;;  %s2623_s19 = scalar_lea.vmem %s2881_s4, %s1962_s27  ;;  %p573_p1 = scmp.lt.s32.totalorder %s570_s9, 8  ;;  %v2636_v30 = vsel %vm870_vm2, %v880_v23, %v881_v26  ;;  %v654_v32 = vld [vmem:[%s2614_s11] sm:$0xff]  ;;  %v655_v35 = vld [vmem:[%s2614_s11 + $0x8] sm:$0xff]  ;;  %v656_v40 = vld [vmem:[%s2614_s11 + $0x10] sm:$0xff] }
  0x2d   : > { %2099 = vmatpush3.msk.msra.mxu1 %vm677_vm0, %v1983_v11  ;;  %2107 = vmatpush3.msk.msra.mxu0 %vm677_vm0, %v1989_v13  ;;  %v646_v31 = vld [vmem:[%s2623_s19] sm:$0xff]  ;;  %v647_v33 = vld [vmem:[%s2623_s19 + $0x8] sm:$0x1]  ;;  %v648_v34 = vld [vmem:[%s2623_s19 + $0x10] sm:$0xff]  ;;  %s2727_s24 = sand.u32 1, %s2357_s10   ;;  %s2021_s27 = sshll.u32 %s2369_s13, 3 }
  0x2e   : > { %2087 = vmatprep.mubr.msk.f32.mxu1 %vm664_vm1, %v2577_v16  ;;  %2095 = vmatprep.mubr.msk.f32.mxu0 %vm664_vm1, %v2609_v27  ;;  %s2929_s9 = smov (!%p573_p1, %s570_s9), 8  ;;  %v1201_v36 = vrot.slane %v646_v31, 1  ;;  %v1202_v37 = vrot.slane %v647_v33, 1  ;;  %v649_v38 = vld [vmem:[%s2623_s19 + $0x18] sm:$0x1]  ;;  %v650_v39 = vld [vmem:[%s2623_s19 + $0x20] sm:$0xff]  ;;  %s1668_s14 = sadd.s32 %s2021_s27, %s2517_s18 }
  0x2f   : > { %2114 = vmatprep.subr.msk.mxu1 %vm677_vm0, %v1995_v28  ;;  %2122 = vmatprep.subr.msk.mxu0 %vm677_vm0, %v2001_v29  ;;  %s1953_s26 = sshll.u32 %s2929_s9, 1  ;;  %v651_v43 = vld [vmem:[%s2623_s19 + $0x28] sm:$0x1]  ;;  %v1204_v44 = vrot.slane %v648_v34, 1  ;;  %v652_v45 = vld [vmem:[%s2623_s19 + $0x30] sm:$0xff]  ;;  %v657_v46 = vld [vmem:[%s2614_s11 + $0x18] sm:$0xff]  ;;  %s607_s23 = sadd.s32 %s2149_s25, %s2929_s9 }
  0x30   : > { %2088 = vmatmul.mubr.msk.f32.gmra.mxu1 %vm664_vm1, %v2590_v21  ;;  %2096 = vmatmul.mubr.msk.f32.gmra.mxu0 %vm664_vm1, %v2636_v30  ;;  %s577_s15 = sadd.s32 %s2148_s21, %s1953_s26  ;;  %v1205_v47 = vrot.slane %v649_v38, 1  ;;  %v1203_v48 = vsel %vm870_vm2, %v1201_v36, %v1202_v37  ;;  %v653_v49 = vld [vmem:[%s2623_s19 + $0x38] sm:$0x1]  ;;  %v1207_v50 = vrot.slane %v650_v39, 1  ;;  %v1208_v51 = vrot.slane %v651_v43, 1  ;;  %s1958_s29 = sshll.u32 %s607_s23, 3 }
  0x31   : > { %2100 = vmatprep.mubr.msk.f32.mxu1 %vm664_vm1, %v646_v31  ;;  %2108 = vmatprep.mubr.msk.f32.mxu0 %vm664_vm1, %v654_v32  ;;  %s1954_s21 = sshll.u32 %s577_s15, 3  ;;  %v1210_v52 = vrot.slane %v652_v45, 1  ;;  %v1211_v54 = vrot.slane %v653_v49, 1  ;;  %s609_s9 = scalar_lea.vmem %s2880_s3, %s1958_s29 }
  0x32   : > { %v1206_v53 = vsel %vm870_vm2, %v1204_v44, %v1205_v47  ;;  %s579_s20 = scalar_lea.vmem %s2878_s1, %s1954_s21  ;;  %v1209_v55 = vsel %vm870_vm2, %v1207_v50, %v1208_v51  ;;  %v660_v61 = vld [vmem:[%s609_s9] sm:$0xff]  ;;  %s1948_s26 = sshll.u32 %s2727_s24, 5 }
  0x33   : > { %v1212_v56 = vsel %vm870_vm2, %v1210_v52, %v1211_v54  ;;  %v658_v57 = vld [vmem:[%s579_s20] sm:$0xff]  ;;  %v659_v58 = vld [vmem:[%s579_s20 + $0x8] sm:$0x1]  ;;  %s535_s30 = scalar_lea.vmem [#allocation2], %s1948_s26  ;;  %s2022_s15 = sshll.u32 %s1668_s14, 7 }
  0x34   : > { %2101 = vmatmul.mubr.msk.f32.vlgmr.msra.gmra.mxu1 %vm664_vm1, %v648_v34  ;;  %2109 = vmatmul.mubr.msk.f32.vlgmr.msra.gmra.mxu0 %vm664_vm1, %v655_v35  ;;  %v1510_v59 = vrot.slane %v658_v57, 1  ;;  %v1511_v60 = vrot.slane %v659_v58, 1  ;;  %s1671_s17 = sshll.u32 %s535_s30, 4  ;;  %s2743_s11 = scalar_lea.hbm %s2884_s7, %s2022_s15  ;;  %s2735_s17 = int_to_ptr.vmem [resolvable:$true] %s1671_s17 }
  0x35   : > { %2115 = vmatpush3.msk.msra.mxu1 %vm677_vm0, %v1995_v28  ;;  %2123 = vmatpush3.msk.msra.mxu0 %vm677_vm0, %v2001_v29  ;;  %s1648_s19 = scalar_lea.sflag [#allocation3], %s2727_s24  ;;  %s2233_s20 = scalar_lea.vmem %s2735_s17, 512 }
  0x36   : > { %2103 = vmatprep.mubr.msk.f32.mxu1 %vm664_vm1, %v650_v39  ;;  %2111 = vmatprep.mubr.msk.f32.mxu0 %vm664_vm1, %v656_v40  ;;  %v1512_v62 = vsel %vm870_vm2, %v1510_v59, %v1511_v60  ;;  %p2234_p2 = scmp.ne.s32.totalorder %s2735_s17, %s2233_s20  ;;  %s2383_s23 = smov [#allocation2]  }
  0x37   : > { %2130 = vmatprep.subr.msk.mxu1 %vm677_vm0, %v2007_v41  ;;  %2138 = vmatprep.subr.msk.mxu0 %vm677_vm0, %v2013_v42  ;;  %s2237_s29 = sshll.u32 %s2383_s23, 4  ;;  %s2238_s29 = int_to_ptr.vmem [resolvable:$false] %s2237_s29 }
  0x38   : > { %2104 = vmatmul.mubr.msk.f32.gmra.mxu1 %vm664_vm1, %v652_v45  ;;  %2112 = vmatmul.mubr.msk.f32.gmra.mxu0 %vm664_vm1, %v657_v46  ;;  %p2235_p4 = pnand %p2234_p2, %p2491_p3  ;;  %s2239_s28 = scalar_lea.vmem %s2238_s29, 1024 }
  0x39   : > { %2116 = vmatprep.mubr.msk.f32.mxu1 %vm664_vm1, %v1203_v48  ;;  %2124 = vmatprep.mubr.msk.f32.mxu0 %vm664_vm1, %v2556_v5  ;;  %p2240_p6 = scmp.lt.s32.totalorder %s2735_s17, %s2238_s29  ;;  %p2241_p7 = scmp.lt.s32.totalorder %s2239_s28, %s2233_s20 }
  0x3a   : > { %p2236_p5 = pneg %p2235_p4 }
  0x3b   : > { %p2242_p9 = por %p2241_p7, %p2240_p6 }
  0x3c   : > { %2117 = vmatmul.mubr.msk.f32.vlgmr.msra.gmra.mxu1 %vm664_vm1, %v1206_v53  ;;  %2125 = vmatmul.mubr.msk.f32.vlgmr.msra.gmra.mxu0 %vm664_vm1, %v2577_v16 }
  0x3d   : > { %2131 = vmatpush3.msk.msra.mxu1 %vm677_vm0, %v2007_v41  ;;  %2139 = vmatpush3.msk.msra.mxu0 %vm677_vm0, %v2013_v42  ;;  %p2243_p10 = pnand %p2242_p9, %p2236_p5 }
  0x3e   : > { %2119 = vmatprep.mubr.msk.f32.mxu1 %vm664_vm1, %v1209_v55  ;;  %2127 = vmatprep.mubr.msk.f32.mxu0 %vm664_vm1, %v2590_v21 }
  0x40   : > { %2120 = vmatmul.mubr.msk.f32.gmra.mxu1 %vm664_vm1, %v1212_v56  ;;  %2128 = vmatmul.mubr.msk.f32.gmra.mxu0 %vm664_vm1, %v658_v57 }
  0x41   : > { %2132 = vmatprep.mubr.msk.f32.mxu1 %vm664_vm1, %v2561_v8  ;;  %2140 = vmatprep.mubr.msk.f32.mxu0 %vm664_vm1, %v2602_v25 }
  0x44   : > { %2133 = vmatmul.mubr.msk.f32.vlgmr.msra.gmra.mxu1 %vm664_vm1, %v2559_v7  ;;  %2141 = vmatmul.mubr.msk.f32.vlgmr.msra.gmra.mxu0 %vm664_vm1, %v2609_v27 }
  0x45   : > { %2135 = vmatprep.mubr.msk.f32.mxu1 %vm664_vm1, %v2573_v14  ;;  %2143 = vmatprep.mubr.msk.f32.mxu0 %vm664_vm1, %v2636_v30 }
  0x48   : > { %2136 = vmatmul.mubr.msk.f32.gmra.mxu1 %vm664_vm1, %v660_v61  ;;  %2144 = vmatmul.mubr.msk.f32.gmra.mxu0 %vm664_vm1, %v1512_v62 }
  0xe8   : > { %v2078_v63 = vpop.f32.mrf.mxu0  ;;  %v2081_v0 = vpop.f32.mrf.mxu1 }
  0xea   : > { %v747_v1 = vpop.f32.mrf.mxu0  ;;  %v757_v2 = vpop.f32.mrf.mxu1 }
  0xec   : > { %v2086_v3 = vpop.f32.mrf.mxu1  ;;  %v2094_v4 = vpop.f32.mrf.mxu0 }
  0xed   : > { %v853_v11 = vadd.f32 %v2086_v3, %v2078_v63 }
  0xee   : > { %v847_v5 = vpop.f32.mrf.mxu1  ;;  %v962_v6 = vpop.f32.mrf.mxu0 }
  0xef   : > { %v848_v14 = vadd.f32 %v847_v5, %v747_v1  ;;  %v982_v17 = vadd.f32 %v2094_v4, %v853_v11 }
  0xf0   : > { %v2089_v7 = vpop.f32.mrf.mxu1  ;;  %v2097_v8 = vpop.f32.mrf.mxu0 }
  0xf1   : > { %v863_v18 = vadd.f32 %v2089_v7, %v2081_v0  ;;  %v981_v21 = vadd.f32 %v962_v6, %v848_v14 }
  0xf2   : > { %v857_v9 = vpop.f32.mrf.mxu1  ;;  %v972_v10 = vpop.f32.mrf.mxu0 }
  0xf3   : > { %v858_v23 = vadd.f32 %v857_v9, %v757_v2  ;;  %v984_v26 = vadd.f32 %v2097_v8, %v863_v18 }
  0xf4   : > { %v2102_v12 = vpop.f32.mrf.mxu1  ;;  %v2110_v13 = vpop.f32.mrf.mxu0 }
  0xf5   : > { %v1088_v22 = vadd.f32 %v2102_v12, %v982_v17  ;;  %v983_v32 = vadd.f32 %v972_v10, %v858_v23 }
  0xf6   : > { %v1068_v15 = vpop.f32.mrf.mxu1  ;;  %v1174_v16 = vpop.f32.mrf.mxu0 }
  0xf7   : > { %v1087_v27 = vadd.f32 %v1068_v15, %v981_v21  ;;  %v1194_v30 = vadd.f32 %v2110_v13, %v1088_v22 }
  0xf8   : > { %v2105_v19 = vpop.f32.mrf.mxu1  ;;  %v2113_v20 = vpop.f32.mrf.mxu0 }
  0xf9   : > { %v1090_v31 = vadd.f32 %v2105_v19, %v984_v26  ;;  %v1193_v35 = vadd.f32 %v1174_v16, %v1087_v27 }
  0xfa   : > { %v1078_v24 = vpop.f32.mrf.mxu1  ;;  %v1184_v25 = vpop.f32.mrf.mxu0 }
  0xfb   : > { %v1089_v37 = vadd.f32 %v1078_v24, %v983_v32  ;;  %v1196_v40 = vadd.f32 %v2113_v20, %v1090_v31 }
  0xfc   : > { %v2118_v28 = vpop.f32.mrf.mxu1  ;;  %v2126_v29 = vpop.f32.mrf.mxu0 }
  0xfd   : > { %v1312_v36 = vadd.f32 %v2118_v28, %v1194_v30  ;;  %v1195_v46 = vadd.f32 %v1184_v25, %v1089_v37 }
  0xfe   : > { %v1292_v33 = vpop.f32.mrf.mxu1  ;;  %v1389_v34 = vpop.f32.mrf.mxu0 }
  0xff   : > { %v1311_v41 = vadd.f32 %v1292_v33, %v1193_v35  ;;  %v1409_v44 = vadd.f32 %v2126_v29, %v1312_v36 }
 0x100   : > { %v2121_v38 = vpop.f32.mrf.mxu1  ;;  %v2129_v39 = vpop.f32.mrf.mxu0 }
 0x101   : > { %v1314_v45 = vadd.f32 %v2121_v38, %v1196_v40  ;;  %v1408_v49 = vadd.f32 %v1389_v34, %v1311_v41 }
 0x102   : > { %v1302_v42 = vpop.f32.mrf.mxu1  ;;  %v1399_v43 = vpop.f32.mrf.mxu0 }
 0x103   : > { %v1313_v51 = vadd.f32 %v1302_v42, %v1195_v46  ;;  %v1411_v54 = vadd.f32 %v2129_v39, %v1314_v45 }
 0x104   : > { %v2134_v47 = vpop.f32.mrf.mxu1  ;;  %v2142_v48 = vpop.f32.mrf.mxu0 }
 0x105   : > { %v1506_v50 = vadd.f32 %v2134_v47, %v1409_v44  ;;  %v1410_v61 = vadd.f32 %v1399_v43, %v1313_v51 }
 0x106   : > { %v1486_v52 = vpop.f32.mrf.mxu1  ;;  %v1586_v53 = vpop.f32.mrf.mxu0 }
 0x107   : > { %v1606_v55 = vadd.f32 %v2142_v48, %v1506_v50  ;;  %v1505_v56 = vadd.f32 %v1486_v52, %v1408_v49 }
 0x108   : > { %v2137_v57 = vpop.f32.mrf.mxu1  ;;  %v2145_v60 = vpop.f32.mrf.mxu0 }
 0x109   : > { %1611 = vst.msk [vmem:[%s535_s30 + $0x8] sm:$0xff] %vm1609_vm3, %v1606_v55  ;;  %v1605_v58 = vadd.f32 %v1586_v53, %v1505_v56  ;;  %v1508_v59 = vadd.f32 %v2137_v57, %v1411_v54  ;;  %v1630_v1 = vmul.f32 %v1606_v55, %v1606_v55  ;;  %v1615_v5 = vsel %vm1609_vm3, %v1606_v55, 0.0 }
 0x10a   : > { %v1496_v62 = vpop.f32.mrf.mxu1  ;;  %v1596_v4 = vpop.f32.mrf.mxu0 }
 0x10b   : > { %1610 = vst.msk [vmem:[%s535_s30] sm:$0xff] %vm1609_vm3, %v1605_v58  ;;  %v1629_v63 = vmul.f32 %v1605_v58, %v1605_v58  ;;  %v1608_v0 = vadd.f32 %v2145_v60, %v1508_v59  ;;  %v1614_v2 = vsel %vm1609_vm3, %v1605_v58, 0.0  ;;  %v1507_v3 = vadd.f32 %v1496_v62, %v1410_v61 }
 0x10c   : > { %v1616_v8 = vadd.f32 %v1615_v5, %v1614_v2  ;;  %v1634_v9 = vsel %vm1609_vm3, %v1630_v1, 0.0 }
 0x10d   : > { %1613 = vst.msk [vmem:[%s535_s30 + $0x18] sm:$0xff] %vm1609_vm3, %v1608_v0  ;;  %v1633_v6 = vsel %vm1609_vm3, %v1629_v63, 0.0  ;;  %v1607_v7 = vadd.f32 %v1596_v4, %v1507_v3  ;;  %v1632_v10 = vmul.f32 %v1608_v0, %v1608_v0 }
 0x10e   : > { %v1635_v13 = vadd.f32 %v1634_v9, %v1633_v6 }
 0x10f   : > { %1612 = vst.msk [vmem:[%s535_s30 + $0x10] sm:$0xff] %vm1609_vm3, %v1607_v7  ;;  %v1617_v11 = vsel %vm1609_vm3, %v1607_v7, 0.0  ;;  %v1631_v12 = vmul.f32 %v1607_v7, %v1607_v7 }
 0x110   : > { %v1618_v14 = vadd.f32 %v1617_v11, %v1616_v8 }
 0x111   : > { %2246 = shalt.err (!%p2243_p10)
}
 0x112   : > { %s2247_s25 = scalar_lea.hbm %s2743_s11, 512  ;;  %s2251_s27 = scalar_lea.hbm %s2884_s7, 2048 }
 0x113   : > { %p2248_p11 = scmp.ne.s32.totalorder %s2743_s11, %s2247_s25  ;;  %p2252_p0 = scmp.lt.s32.totalorder %s2743_s11, %s2884_s7 }
 0x114   : > { %p2253_p1 = scmp.lt.s32.totalorder %s2251_s27, %s2247_s25 }
 0x115   : > { %p2249_p12 = pnand %p2248_p11, %p2491_p3 }
 0x116   : > { %p2254_p2 = por %p2253_p1, %p2252_p0 }
 0x117   : > { %p2250_p13 = pneg %p2249_p12 }
 0x119   : > { %p2255_p4 = pnand %p2254_p2, %p2250_p13 }
 0x11b   : > { %2258 = shalt.err (!%p2255_p4)
}
 0x11c   : > { %s2384_s15 = smov 128   ;;  %s2385_s18 = smov 8   ;;  %v1619_v15 = vsel %vm1609_vm3, %v1608_v0, 0.0  ;;  %v1636_v16 = vsel %vm1609_vm3, %v1631_v12, 0.0  ;;  %v1638_v19 = vsel %vm1609_vm3, %v1632_v10, 0.0  ;;  %vm1627_vm4 = vcmask 57344  }
 0x11d   : > { %2150 = dma.vmem_to_hbm [thread:$0]  (%p2491_p3), %s2735_s17, 512, %s2743_s11, %s1648_s19, %s2384_s15, %s2384_s15, %s2385_s18   ;;  %v1620_v17 = vadd.f32 %v1619_v15, %v1618_v14  ;;  %v1637_v18 = vadd.f32 %v1636_v16, %v1635_v13 }
 0x11e   : > { %s2023_s21 = sshll.u32 %s2369_s13, 1  ;;  %s2908_s11 = sadd.s32 4294967295, %s2381_s16  }
 0x11f   : > { %v1621_v20 = vrot.slane %v1620_v17, 4  ;;  %v1639_v21 = vadd.f32 %v1638_v19, %v1637_v18  ;;  %s1685_s17 = sadd.s32 %s2365_s12, %s2023_s21  ;;  %s2778_s19 = sand.u32 1, %s2908_s11  }
 0x120   : > { %s2024_s20 = sshll.u32 %s1685_s17, 4  ;;  %s541_s23 = scalar_lea.vmem [#allocation4], %s2727_s24 }
 0x121   : > { %v1622_v22 = vadd.f32 %v1621_v20, %v1620_v17  ;;  %v1640_v23 = vrot.slane %v1639_v21, 4  ;;  %s1689_s29 = sshll.u32 %s541_s23, 4  ;;  %s547_s13 = scalar_lea.vmem [#allocation6], %s2727_s24  ;;  %s2789_s29 = int_to_ptr.vmem [resolvable:$true] %s1689_s29 }
 0x122   : > { %s1704_s28 = sshll.u32 %s547_s13, 4  ;;  %s2787_s12 = scalar_lea.hbm %s2885_s8, %s2024_s20  ;;  %s2797_s28 = int_to_ptr.vmem [resolvable:$true] %s1704_s28 }
 0x123   : > { %v1641_v24 = vadd.f32 %v1640_v23, %v1639_v21  ;;  %v1623_v25 = vrot.slane %v1622_v22, 2  ;;  %s2909_s14 = sld [smem:[#allocation17_spill]]  ;;  %s1653_s15 = scalar_lea.sflag [#allocation5], %s2778_s19 }
 0x124   : > { %s2259_s21 = scalar_lea.vmem %s2789_s29, 16  ;;  %s2386_s17 = smov [#allocation4]  }
 0x125   : > { %v1642_v26 = vrot.slane %v1641_v24, 2  ;;  %v1624_v27 = vadd.f32 %v1623_v25, %v1622_v22  ;;  %p2260_p5 = scmp.ne.s32.totalorder %s2789_s29, %s2259_s21  ;;  %s2263_s11 = sshll.u32 %s2386_s17, 4  ;;  %s2264_s11 = int_to_ptr.vmem [resolvable:$false] %s2263_s11 }
 0x126   : > { %s2265_s25 = scalar_lea.vmem %s2264_s11, 32  ;;  %p2266_p9 = scmp.lt.s32.totalorder %s2789_s29, %s2264_s11 }
 0x127   : > { %v1625_v28 = vrot.slane %v1624_v27, 1  ;;  %v1643_v29 = vadd.f32 %v1642_v26, %v1641_v24  ;;  %p2261_p6 = pnand %p2260_p5, %p2491_p3  ;;  %p2267_p10 = scmp.lt.s32.totalorder %s2265_s25, %s2259_s21 }
 0x129   : > { %v1626_v30 = vadd.f32 %v1625_v28, %v1624_v27  ;;  %v1644_v31 = vrot.slane %v1643_v29, 1  ;;  %s2910_s18 = smov %s2909_s14  ;;  %s2795_s30 = scalar_lea.hbm %s2909_s14, %s2024_s20 }
 0x12a   : > { %p2262_p7 = pneg %p2261_p6  ;;  %p2268_p11 = por %p2267_p10, %p2266_p9 }
 0x12b   : > { %1628 = vst.msk [vmem:[%s541_s23] sm:$0x1] %vm1627_vm4, %v1626_v30  ;;  %v1645_v32 = vadd.f32 %v1644_v31, %v1643_v29 }
 0x12c   : > { %p2269_p12 = pnand %p2268_p11, %p2262_p7 }
 0x12e   : > { %2272 = shalt.err (!%p2269_p12)
}
 0x12f   : > { %s2273_s20 = scalar_lea.hbm %s2787_s12, 16  ;;  %s2277_s26 = scalar_lea.hbm %s2885_s8, 64 }
 0x130   : > { %p2274_p13 = scmp.ne.s32.totalorder %s2787_s12, %s2273_s20  ;;  %p2278_p2 = scmp.lt.s32.totalorder %s2787_s12, %s2885_s8 }
 0x131   : > { %p2279_p4 = scmp.lt.s32.totalorder %s2277_s26, %s2273_s20 }
 0x132   : > { %p2275_p0 = pnand %p2274_p13, %p2491_p3 }
 0x133   : > { %p2280_p5 = por %p2279_p4, %p2278_p2 }
 0x134   : > { %p2276_p1 = pneg %p2275_p0 }
 0x136   : > { %p2281_p6 = pnand %p2280_p5, %p2276_p1 }
 0x138   : > { %2284 = shalt.err (!%p2281_p6)
}
 0x139   : > { %2151 = dma.vmem_to_hbm [thread:$0]  (%p2491_p3), %s2789_s29, 16, %s2787_s12, %s1653_s15   ;;  %1646 = vst.msk [vmem:[%s547_s13] sm:$0x1] %vm1627_vm4, %v1645_v32 }
 0x13a   : > { %s2285_s21 = scalar_lea.vmem %s2797_s28, 16  ;;  %s2387_s17 = smov [#allocation6]  }
 0x13b   : > { %p2286_p7 = scmp.ne.s32.totalorder %s2797_s28, %s2285_s21  ;;  %s2289_s11 = sshll.u32 %s2387_s17, 4  ;;  %s2290_s11 = int_to_ptr.vmem [resolvable:$false] %s2289_s11 }
 0x13c   : > { %s2291_s25 = scalar_lea.vmem %s2290_s11, 32  ;;  %p2292_p11 = scmp.lt.s32.totalorder %s2797_s28, %s2290_s11 }
 0x13d   : > { %p2287_p9 = pnand %p2286_p7, %p2491_p3  ;;  %p2293_p12 = scmp.lt.s32.totalorder %s2291_s25, %s2285_s21 }
 0x13f   : > { %p2288_p10 = pneg %p2287_p9  ;;  %p2294_p13 = por %p2293_p12, %p2292_p11 }
 0x141   : > { %p2295_p0 = pnand %p2294_p13, %p2288_p10 }
 0x143   : > { %2298 = shalt.err (!%p2295_p0)
}
 0x144   : > { %s2299_s24 = scalar_lea.hbm %s2795_s30, 16  ;;  %s2303_s12 = scalar_lea.hbm %s2910_s18, 64 }
 0x145   : > { %p2300_p1 = scmp.ne.s32.totalorder %s2795_s30, %s2299_s24  ;;  %p2304_p5 = scmp.lt.s32.totalorder %s2795_s30, %s2910_s18 }
 0x146   : > { %p2305_p6 = scmp.lt.s32.totalorder %s2303_s12, %s2299_s24 }
 0x147   : > { %p2301_p2 = pnand %p2300_p1, %p2491_p3 }
 0x148   : > { %p2306_p7 = por %p2305_p6, %p2304_p5 }
 0x149   : > { %p2302_p4 = pneg %p2301_p2 }
 0x14b   : > { %p2307_p9 = pnand %p2306_p7, %p2302_p4 }
 0x14d   : > { %2310 = shalt.err (!%p2307_p9)
}
 0x14e   : > { %2152 = dma.vmem_to_hbm [thread:$0]  (%p2491_p3), %s2797_s28, 16, %s2795_s30, %s1653_s15  }
 0x14f PF: > { %s2911_s9 = sld [smem:[#allocation9_spill]]  ;;  %p2166_p10 = scmp.ge.s32.totalorder %s2381_s16, 2 }
 0x151   : > { %p2157_p11 = pnand %p2166_p10, %p2502_p8 }
 0x153   : > { %p2158_p12 = pneg %p2157_p11 }
 0x155   : > { %s1716_s27 = sand.u32 1, %s2911_s9  }
 0x156   : > { %s1717_s14 = scalar_lea.sflag [#allocation3], %s1716_s27 }
 0x157   : > { %2344 = dma.done.wait (%p2158_p12), %s1717_s14, 512  }
 0x158   : > { %2346 = vsyncadd (%p2158_p12), %s1717_s14, 4294966784  ;;  %s2913_s21 = sadd.s32 4294967294, %s2381_s16  }
 0x159   : > { %s1725_s22 = sand.u32 1, %s2913_s21  }
 0x15a   : > { %s1726_s17 = scalar_lea.sflag [#allocation5], %s1725_s22 }
 0x15b   : > { %2348 = dma.done.wait (%p2158_p12), %s1726_s17, 32  }
 0x15c   : > { %2350 = vsyncadd (%p2158_p12), %s1726_s17, 4294967264  ;;  %s26_s16 = sadd.s32 1, %s2381_s16   ;;  %s2914_s19 = sld [smem:[#allocation10_spill]] }
 0x15d   : > { %p23_p3 = scmp.ge.s32.totalorder %s26_s16, 6   ;;  %s2915_s11 = sld [smem:[#allocation16_spill]] }
 0x15e   : > { %s2916_s12 = sld [smem:[#allocation11_spill]]  ;;  %s2920_s30 = smov %s2357_s10 }
 0x15f   : > { %s2917_s13 = sld [smem:[#allocation12_spill]]  ;;  %25 = sbr.rel (!%p23_p3) target bundleno = 9 (0x9), region = 138 }
 0x160   : > { %s2918_s14 = sld [smem:[#allocation13_spill]] }
 0x161   : > { %s2919_s15 = sld [smem:[#allocation14_spill]] }
 0x162   : > { %s2921_s10 = smov %s2914_s19 }
 0x164   :  { %1738 = vsyncpa [#allocation3], 1 }
 0x165   :  { %1740 = vsyncpa [#allocation3 + $0x1], 1 }
 0x166   :  { %1741 = vsyncpa [#allocation5], 1 }
 0x167   :  { %1743 = vsyncpa [#allocation5 + $0x1], 1 }

</bundles_post_ra>
